<compile_context>
chip_gen: v5e
topology: v5e:2x2
jax: 0.10.0
libtpu: 0.0.40
codegen_flags: <defaults>
</compile_context>

<pallas_src>
import jax
import jax.numpy as jnp
from jax.experimental import pallas as pl
from jax.experimental.pallas import tpu as pltpu


def _round_up(x, m):
    return ((x + m - 1) // m) * m


def _vmem_budget_bytes():
    """~75% of physical VMEM: ~96 MiB on v5e/v6e, ~48 MiB on v7x."""
    cap = 64 << 20  # conservative fallback (v7x per-core physical VMEM)
    try:
        info = pltpu.get_tpu_info()
        cap = int(getattr(info, "vmem_capacity_bytes", cap))
    except Exception:
        pass
    budget = (cap * 3) // 4
    return int(min(max(budget, 32 << 20), 100 << 20))


def _pick_batch_tile(n_pad, per_row_bytes, resident_bytes, requested, budget):
    """Largest batch tile that fits the VMEM budget, capped so big batches
    still produce >=4 grid tiles (keeps both v7x TensorCores busy)."""
    fit = max((budget - resident_bytes) // max(per_row_bytes, 1), 8)
    multi_core = max(_round_up(pl.cdiv(n_pad, 4), 8), 128)
    tb = min(int(requested), int(fit), int(multi_core), int(n_pad))
    return max(8, (tb // 8) * 8)


def _make_kernel(num_layers):
    """Fused kernel: normalize + tanh, layer-0 for both permutations via
    split weights, remaining Linear(+ReLU) layers, in-kernel average."""
    num_tail = num_layers - 1

    def kernel(h1_ref, h2_ref, cl_ref, md_ref, sd_ref, mc_ref, sc_ref, *rest):
        w0a_ref, w0b_ref, w0c_ref, b0_ref = rest[0], rest[1], rest[2], rest[3]
        tail = rest[4:-1]            # (w1, b1, w2, b2, ...)
        out_ref = rest[-1]

        cd = w0a_ref.dtype           # MXU operand dtype (bf16)

        # Normalization + tanh, computed ONCE per block (VPU + EUP, f32).
        n1 = jnp.tanh((h1_ref[...] - md_ref[...]) * sd_ref[...])
        n2 = jnp.tanh((h2_ref[...] - md_ref[...]) * sd_ref[...])
        nc = jnp.tanh((cl_ref[...] - mc_ref[...]) * sc_ref[...])

        # Layer 0 for both drug-order permutations via split weight blocks.
        p_cl = jnp.dot(nc.astype(cd), w0c_ref[...],
                       preferred_element_type=jnp.float32) + b0_ref[...]
        p1a = jnp.dot(n1.astype(cd), w0a_ref[...], preferred_element_type=jnp.float32)
        p1b = jnp.dot(n1.astype(cd), w0b_ref[...], preferred_element_type=jnp.float32)
        p2a = jnp.dot(n2.astype(cd), w0a_ref[...], preferred_element_type=jnp.float32)
        p2b = jnp.dot(n2.astype(cd), w0b_ref[...], preferred_element_type=jnp.float32)

        z_in = p1a + p2b + p_cl      # cat(h1, h2, cl) ordering
        z_pm = p2a + p1b + p_cl      # cat(h2, h1, cl) ordering

        if num_tail == 0:
            out_ref[...] = (0.5 * (z_in + z_pm)).astype(out_ref.dtype)
            return

        # Stack both permutations along the batch axis so the tail layers run
        # as single tall MXU matmuls with the same resident weights.
        h = jnp.concatenate(
            [jnp.maximum(z_in, 0.0), jnp.maximum(z_pm, 0.0)], axis=0)

        for li in range(num_tail):
            w_ref = tail[2 * li]
            b_ref = tail[2 * li + 1]
            h = jnp.dot(h.astype(cd), w_ref[...],
                        preferred_element_type=jnp.float32) + b_ref[...]
            if li < num_tail - 1:
                h = jnp.maximum(h, 0.0)   # ReLU (Dropout == identity in eval)

        tb = out_ref.shape[0]
        out_ref[...] = (0.5 * (h[:tb] + h[tb:])).astype(out_ref.dtype)

    return kernel


def prepare_params(x_drugs, cell_line_features, torch_weights, torch_biases,
                   *, weight_dtype=jnp.bfloat16):
    """One-time parameter packing (hoisted off the per-call path):
    normalization constants, transposed weights split by input block,
    every width zero-padded to a lane-dense multiple of 128, bf16 weights."""
    Dd = x_drugs.shape[1]

    mean_d = x_drugs.mean(0).reshape(1, -1)
    std_d = jnp.std(x_drugs, axis=0, ddof=1)          # torch default: unbiased
    std_d = jnp.where(std_d == 0, 0.01, std_d)
    inv_std_d = (1.0 / std_d).reshape(1, -1)

    mean_c = cell_line_features.mean(0).reshape(1, -1)
    std_c = jnp.std(cell_line_features, axis=0, ddof=1)
    std_c = jnp.where(std_c == 0, 0.01, std_c)
    inv_std_c = (1.0 / std_c).reshape(1, -1)

    num_layers = len(torch_weights)
    out_dim = int(torch_weights[-1].shape[0])

    # Layer 0: transpose to [Din, H1], pad output width to 128, split rows
    # into drug-slot-1 / drug-slot-2 / cell-line blocks.
    w0 = torch_weights[0].T.astype(jnp.float32)       # [Din, H1]
    h1_pad = _round_up(w0.shape[1], 128)
    w0 = jnp.pad(w0, ((0, 0), (0, h1_pad - w0.shape[1])))
    b0 = jnp.pad(torch_biases[0].reshape(1, -1).astype(jnp.float32),
                 ((0, 0), (0, h1_pad - torch_biases[0].shape[0])))
    w0a = w0[:Dd].astype(weight_dtype)
    w0b = w0[Dd:2 * Dd].astype(weight_dtype)
    w0c = w0[2 * Dd:].astype(weight_dtype)

    # Remaining layers: pad input rows to previous padded width, output cols
    # to a multiple of 128 (zero padding is exact: padded activations stay 0).
    tail_w, tail_b = [], []
    prev_pad = h1_pad
    for li in range(1, num_layers):
        w = torch_weights[li].T.astype(jnp.float32)    # [in, out]
        out_p = _round_up(w.shape[1], 128)
        w = jnp.pad(w, ((0, prev_pad - w.shape[0]), (0, out_p - w.shape[1])))
        b = jnp.pad(torch_biases[li].reshape(1, -1).astype(jnp.float32),
                    ((0, 0), (0, out_p - torch_biases[li].shape[0])))
        tail_w.append(w.astype(weight_dtype))
        tail_b.append(b)
        prev_pad = out_p

    return (mean_d, inv_std_d, mean_c, inv_std_c,
            w0a, w0b, w0c, b0, tail_w, tail_b, out_dim)


def _predict_pallas(h1, h2, cl, params, *, requested_tb=512):
    (mean_d, inv_std_d, mean_c, inv_std_c,
     w0a, w0b, w0c, b0, tail_w, tail_b, out_dim) = params

    B, Dd = h1.shape
    Fc = cl.shape[1]
    num_layers = 1 + len(tail_w)
    out_pad = tail_b[-1].shape[1] if tail_b else b0.shape[1]

    # --- VMEM accounting -----------------------------------------------------
    wbytes = w0a.dtype.itemsize
    # Constant operands are double-buffered by the default pipeline (x2).
    resident = 2 * (
        wbytes * (w0a.size + w0b.size + w0c.size + sum(int(w.size) for w in tail_w))
        + 4 * (b0.size + sum(int(b.size) for b in tail_b)
               + mean_d.size + inv_std_d.size + mean_c.size + inv_std_c.size))
    # Live activation width per row: max over layers of (in + out), both perms.
    widths = [(2 * Dd + Fc) + b0.shape[1]]
    prev = b0.shape[1]
    for b in tail_b:
        widths.append(prev + b.shape[1])
        prev = b.shape[1]
    live = max(widths)
    per_row = 4 * (2 * (2 * Dd + Fc)      # streamed input tiles (double-buffered)
                   + 2 * out_pad          # output tile (double-buffered)
                   + 2 * live)            # two permutations' live activations

    budget = _vmem_budget_bytes()
    N_pad = _round_up(B, 8)
    TB = _pick_batch_tile(N_pad, per_row, resident, requested_tb, budget)

    if N_pad != B:
        pad = N_pad - B
        h1 = jnp.pad(h1, ((0, pad), (0, 0)))
        h2 = jnp.pad(h2, ((0, pad), (0, 0)))
        cl = jnp.pad(cl, ((0, pad), (0, 0)))

    grid = (pl.cdiv(N_pad, TB),)
    const = lambda i: (0, 0)
    row = lambda i: (i, 0)

    in_specs = [
        pl.BlockSpec((TB, Dd), row),          # h_drug_1 tile (streamed)
        pl.BlockSpec((TB, Dd), row),          # h_drug_2 tile (streamed)
        pl.BlockSpec((TB, Fc), row),          # cell-line tile (streamed)
        pl.BlockSpec(mean_d.shape, const),    # normalization constants
        pl.BlockSpec(inv_std_d.shape, const),
        pl.BlockSpec(mean_c.shape, const),
        pl.BlockSpec(inv_std_c.shape, const),
        pl.BlockSpec(w0a.shape, const),       # layer-0 split weights (resident)
        pl.BlockSpec(w0b.shape, const),
        pl.BlockSpec(w0c.shape, const),
        pl.BlockSpec(b0.shape, const),
    ]
    flat_tail = []
    for w, b in zip(tail_w, tail_b):
        in_specs.append(pl.BlockSpec(w.shape, const))
        in_specs.append(pl.BlockSpec(b.shape, const))
        flat_tail += [w, b]

    out_specs = pl.BlockSpec((TB, out_pad), row)

    out = pl.pallas_call(
        _make_kernel(num_layers),
        out_shape=jax.ShapeDtypeStruct((N_pad, out_pad), jnp.float32),
        grid=grid,
        in_specs=in_specs,
        out_specs=out_specs,
        compiler_params=pltpu.CompilerParams(
            dimension_semantics=("parallel",),   # batch tiles shard over TCs
            vmem_limit_bytes=int(budget)),
    )(h1, h2, cl, mean_d, inv_std_d, mean_c, inv_std_c,
      w0a, w0b, w0c, b0, *flat_tail)

    return out[:B, :out_dim]


def deep_synergy_forward(x_drugs, cell_line_features, drug_pairs, cell_lines,
                         params, *, tb=512):
    """Full DeepSynergyPredictor.forward (eval mode)."""
    # get_batch: data-dependent row gather done in plain JAX glue.
    h1 = jnp.take(x_drugs, drug_pairs[:, 0], axis=0)
    h2 = jnp.take(x_drugs, drug_pairs[:, 1], axis=0)
    cl = jnp.take(cell_line_features, cell_lines, axis=0)
    return _predict_pallas(h1, h2, cl, params, requested_tb=tb)


if __name__ == "__main__":
    key = jax.random.PRNGKey(0)

    # Small shapes consistent with the module.
    num_drugs, num_cell_lines = 10, 4
    Dd, Fc = 32, 16                      # drug feature dim, cell-line feature dim
    B = 8                                # batch of drug-drug pairs
    predictor_layers = [Dd, 64, 32, 1]
    layer_dims = list(predictor_layers)
    layer_dims[0] += Fc + Dd             # as in DeepSynergyPredictor.__init__

    keys = jax.random.split(key, 6)
    x_drugs = jax.random.normal(keys[0], (num_drugs, Dd), dtype=jnp.float32)
    cl_feats = jax.random.normal(keys[1], (num_cell_lines, Fc), dtype=jnp.float32)
    drug_pairs = jax.random.randint(keys[2], (B, 2), 0, num_drugs)
    cell_lines = jax.random.randint(keys[3], (B,), 0, num_cell_lines)

    # nn.Linear-style parameters in PyTorch layout ([out, in], [out]).
    weights, biases = [], []
    wkeys = jax.random.split(keys[4], len(layer_dims) - 1)
    bkeys = jax.random.split(keys[5], len(layer_dims) - 1)
    for i in range(len(layer_dims) - 1):
        bound = 1.0 / (layer_dims[i] ** 0.5)
        w = jax.random.uniform(wkeys[i], (layer_dims[i + 1], layer_dims[i]),
                               minval=-bound, maxval=bound, dtype=jnp.float32)
        b = jax.random.uniform(bkeys[i], (layer_dims[i + 1],),
                               minval=-bound, maxval=bound, dtype=jnp.float32)
        weights.append(w)
        biases.append(b)

    params = prepare_params(x_drugs, cl_feats, weights, biases)
    comb = deep_synergy_forward(x_drugs, cl_feats, drug_pairs, cell_lines, params)
    jax.block_until_ready(comb)

    # Pure-JAX f32 reference (eval mode: Dropout == identity).
    mean_ref = jnp.concatenate([x_drugs.mean(0), x_drugs.mean(0), cl_feats.mean(0)])
    std_ref = jnp.concatenate([jnp.std(x_drugs, axis=0, ddof=1),
                               jnp.std(x_drugs, axis=0, ddof=1),
                               jnp.std(cl_feats, axis=0, ddof=1)])
    std_ref = jnp.where(std_ref == 0, 0.01, std_ref)
    h1 = x_drugs[drug_pairs[:, 0]]
    h2 = x_drugs[drug_pairs[:, 1]]
    cl = cl_feats[cell_lines]

    def ref_mlp(xin):
        h = jnp.tanh((xin - mean_ref) / std_ref)
        for li, (w, b) in enumerate(zip(weights, biases)):
            h = h @ w.T + b
            if li < len(weights) - 1:
                h = jnp.maximum(h, 0.0)
        return h

    xi = jnp.concatenate([h1, h2, cl], axis=1)
    xp = jnp.concatenate([h2, h1, cl], axis=1)
    ref = 0.5 * (ref_mlp(xi) + ref_mlp(xp))

    assert comb.shape == ref.shape == (B, 1)
    # Tolerance relaxed vs the f32 reference because kernel weights are bf16
    # (MXU-native); accumulation stays f32.
    assert jnp.allclose(comb, ref, atol=2e-2, rtol=2e-2), "mismatch vs reference"
    print("KERNEL_OK")
</pallas_src>

<mosaic_0001>
module attributes {stable_mosaic.version = 11 : i64} {
  func.func @kernel(%arg0: i32, %arg1: memref<8x32xf32, #tpu.memory_space<vmem>>, %arg2: memref<8x32xf32, #tpu.memory_space<vmem>>, %arg3: memref<8x16xf32, #tpu.memory_space<vmem>>, %arg4: memref<1x32xf32, #tpu.memory_space<vmem>>, %arg5: memref<1x32xf32, #tpu.memory_space<vmem>>, %arg6: memref<1x16xf32, #tpu.memory_space<vmem>>, %arg7: memref<1x16xf32, #tpu.memory_space<vmem>>, %arg8: memref<32x128xbf16, #tpu.memory_space<vmem>>, %arg9: memref<32x128xbf16, #tpu.memory_space<vmem>>, %arg10: memref<16x128xbf16, #tpu.memory_space<vmem>>, %arg11: memref<1x128xf32, #tpu.memory_space<vmem>>, %arg12: memref<128x128xbf16, #tpu.memory_space<vmem>>, %arg13: memref<1x128xf32, #tpu.memory_space<vmem>>, %arg14: memref<128x128xbf16, #tpu.memory_space<vmem>>, %arg15: memref<1x128xf32, #tpu.memory_space<vmem>>, %arg16: memref<8x128xf32, #tpu.memory_space<vmem>>) attributes {dimension_semantics = [#tpu.dimension_semantics<parallel>], iteration_bounds = array<i64: 1>, scalar_prefetch = 0 : i64, scratch_operands = 0 : i64, tpu.core_type = #tpu.core_type<tc>, window_params = [{transform_indices = @transform_0, window_bounds = array<i64: 8, 32>}, {transform_indices = @transform_1, window_bounds = array<i64: 8, 32>}, {transform_indices = @transform_2, window_bounds = array<i64: 8, 16>}, {pipeline_mode = #tpu.pipeline_mode<synchronous>, transform_indices = @transform_3, window_bounds = array<i64: 1, 32>}, {pipeline_mode = #tpu.pipeline_mode<synchronous>, transform_indices = @transform_4, window_bounds = array<i64: 1, 32>}, {pipeline_mode = #tpu.pipeline_mode<synchronous>, transform_indices = @transform_5, window_bounds = array<i64: 1, 16>}, {pipeline_mode = #tpu.pipeline_mode<synchronous>, transform_indices = @transform_6, window_bounds = array<i64: 1, 16>}, {pipeline_mode = #tpu.pipeline_mode<synchronous>, transform_indices = @transform_7, window_bounds = array<i64: 32, 128>}, {pipeline_mode = #tpu.pipeline_mode<synchronous>, transform_indices = @transform_8, window_bounds = array<i64: 32, 128>}, {pipeline_mode = #tpu.pipeline_mode<synchronous>, transform_indices = @transform_9, window_bounds = array<i64: 16, 128>}, {pipeline_mode = #tpu.pipeline_mode<synchronous>, transform_indices = @transform_10, window_bounds = array<i64: 1, 128>}, {pipeline_mode = #tpu.pipeline_mode<synchronous>, transform_indices = @transform_11, window_bounds = array<i64: 128, 128>}, {pipeline_mode = #tpu.pipeline_mode<synchronous>, transform_indices = @transform_12, window_bounds = array<i64: 1, 128>}, {pipeline_mode = #tpu.pipeline_mode<synchronous>, transform_indices = @transform_13, window_bounds = array<i64: 128, 128>}, {pipeline_mode = #tpu.pipeline_mode<synchronous>, transform_indices = @transform_14, window_bounds = array<i64: 1, 128>}, {transform_indices = @transform_15, window_bounds = array<i64: 8, 128>}]} {
    %c0 = arith.constant 0 : index
    %c0_0 = arith.constant 0 : index
    %0 = vector.load %arg1[%c0, %c0_0] : memref<8x32xf32, #tpu.memory_space<vmem>>, vector<8x32xf32>
    %c0_1 = arith.constant 0 : index
    %c0_2 = arith.constant 0 : index
    %1 = vector.load %arg4[%c0_1, %c0_2] : memref<1x32xf32, #tpu.memory_space<vmem>>, vector<1x32xf32>
    %2 = vector.broadcast %1 : vector<1x32xf32> to vector<8x32xf32>
    %3 = arith.subf %0, %2 : vector<8x32xf32>
    %c0_3 = arith.constant 0 : index
    %c0_4 = arith.constant 0 : index
    %4 = vector.load %arg5[%c0_3, %c0_4] : memref<1x32xf32, #tpu.memory_space<vmem>>, vector<1x32xf32>
    %5 = vector.broadcast %4 : vector<1x32xf32> to vector<8x32xf32>
    %6 = arith.mulf %3, %5 : vector<8x32xf32>
    %7 = math.tanh %6 : vector<8x32xf32>
    %c0_5 = arith.constant 0 : index
    %c0_6 = arith.constant 0 : index
    %8 = vector.load %arg2[%c0_5, %c0_6] : memref<8x32xf32, #tpu.memory_space<vmem>>, vector<8x32xf32>
    %c0_7 = arith.constant 0 : index
    %c0_8 = arith.constant 0 : index
    %9 = vector.load %arg4[%c0_7, %c0_8] : memref<1x32xf32, #tpu.memory_space<vmem>>, vector<1x32xf32>
    %10 = vector.broadcast %9 : vector<1x32xf32> to vector<8x32xf32>
    %11 = arith.subf %8, %10 : vector<8x32xf32>
    %c0_9 = arith.constant 0 : index
    %c0_10 = arith.constant 0 : index
    %12 = vector.load %arg5[%c0_9, %c0_10] : memref<1x32xf32, #tpu.memory_space<vmem>>, vector<1x32xf32>
    %13 = vector.broadcast %12 : vector<1x32xf32> to vector<8x32xf32>
    %14 = arith.mulf %11, %13 : vector<8x32xf32>
    %15 = math.tanh %14 : vector<8x32xf32>
    %c0_11 = arith.constant 0 : index
    %c0_12 = arith.constant 0 : index
    %16 = vector.load %arg3[%c0_11, %c0_12] : memref<8x16xf32, #tpu.memory_space<vmem>>, vector<8x16xf32>
    %c0_13 = arith.constant 0 : index
    %c0_14 = arith.constant 0 : index
    %17 = vector.load %arg6[%c0_13, %c0_14] : memref<1x16xf32, #tpu.memory_space<vmem>>, vector<1x16xf32>
    %18 = vector.broadcast %17 : vector<1x16xf32> to vector<8x16xf32>
    %19 = arith.subf %16, %18 : vector<8x16xf32>
    %c0_15 = arith.constant 0 : index
    %c0_16 = arith.constant 0 : index
    %20 = vector.load %arg7[%c0_15, %c0_16] : memref<1x16xf32, #tpu.memory_space<vmem>>, vector<1x16xf32>
    %21 = vector.broadcast %20 : vector<1x16xf32> to vector<8x16xf32>
    %22 = arith.mulf %19, %21 : vector<8x16xf32>
    %23 = math.tanh %22 : vector<8x16xf32>
    %24 = arith.truncf %23 : vector<8x16xf32> to vector<8x16xbf16>
    %c0_17 = arith.constant 0 : index
    %c0_18 = arith.constant 0 : index
    %25 = vector.load %arg10[%c0_17, %c0_18] : memref<16x128xbf16, #tpu.memory_space<vmem>>, vector<16x128xbf16>
    %cst = arith.constant dense<0.000000e+00> : vector<8x128xf32>
    %26 = tpu.matmul %24, %25, %cst {dimension_numbers = #tpu.dot_dimension_numbers<[1], [0], [0], [1], [0, 0, 1, 1], [], []>} : vector<8x16xbf16>, vector<16x128xbf16>, vector<8x128xf32> -> vector<8x128xf32>
    %c0_19 = arith.constant 0 : index
    %c0_20 = arith.constant 0 : index
    %27 = vector.load %arg11[%c0_19, %c0_20] : memref<1x128xf32, #tpu.memory_space<vmem>>, vector<1x128xf32>
    %28 = vector.broadcast %27 : vector<1x128xf32> to vector<8x128xf32>
    %29 = arith.addf %26, %28 : vector<8x128xf32>
    %30 = arith.truncf %7 : vector<8x32xf32> to vector<8x32xbf16>
    %c0_21 = arith.constant 0 : index
    %c0_22 = arith.constant 0 : index
    %31 = vector.load %arg8[%c0_21, %c0_22] : memref<32x128xbf16, #tpu.memory_space<vmem>>, vector<32x128xbf16>
    %cst_23 = arith.constant dense<0.000000e+00> : vector<8x128xf32>
    %32 = tpu.matmul %30, %31, %cst_23 {dimension_numbers = #tpu.dot_dimension_numbers<[1], [0], [0], [1], [0, 0, 1, 1], [], []>} : vector<8x32xbf16>, vector<32x128xbf16>, vector<8x128xf32> -> vector<8x128xf32>
    %33 = arith.truncf %7 : vector<8x32xf32> to vector<8x32xbf16>
    %c0_24 = arith.constant 0 : index
    %c0_25 = arith.constant 0 : index
    %34 = vector.load %arg9[%c0_24, %c0_25] : memref<32x128xbf16, #tpu.memory_space<vmem>>, vector<32x128xbf16>
    %cst_26 = arith.constant dense<0.000000e+00> : vector<8x128xf32>
    %35 = tpu.matmul %33, %34, %cst_26 {dimension_numbers = #tpu.dot_dimension_numbers<[1], [0], [0], [1], [0, 0, 1, 1], [], []>} : vector<8x32xbf16>, vector<32x128xbf16>, vector<8x128xf32> -> vector<8x128xf32>
    %36 = arith.truncf %15 : vector<8x32xf32> to vector<8x32xbf16>
    %c0_27 = arith.constant 0 : index
    %c0_28 = arith.constant 0 : index
    %37 = vector.load %arg8[%c0_27, %c0_28] : memref<32x128xbf16, #tpu.memory_space<vmem>>, vector<32x128xbf16>
    %cst_29 = arith.constant dense<0.000000e+00> : vector<8x128xf32>
    %38 = tpu.matmul %36, %37, %cst_29 {dimension_numbers = #tpu.dot_dimension_numbers<[1], [0], [0], [1], [0, 0, 1, 1], [], []>} : vector<8x32xbf16>, vector<32x128xbf16>, vector<8x128xf32> -> vector<8x128xf32>
    %39 = arith.truncf %15 : vector<8x32xf32> to vector<8x32xbf16>
    %c0_30 = arith.constant 0 : index
    %c0_31 = arith.constant 0 : index
    %40 = vector.load %arg9[%c0_30, %c0_31] : memref<32x128xbf16, #tpu.memory_space<vmem>>, vector<32x128xbf16>
    %cst_32 = arith.constant dense<0.000000e+00> : vector<8x128xf32>
    %41 = tpu.matmul %39, %40, %cst_32 {dimension_numbers = #tpu.dot_dimension_numbers<[1], [0], [0], [1], [0, 0, 1, 1], [], []>} : vector<8x32xbf16>, vector<32x128xbf16>, vector<8x128xf32> -> vector<8x128xf32>
    %42 = arith.addf %32, %41 : vector<8x128xf32>
    %43 = arith.addf %42, %29 : vector<8x128xf32>
    %44 = arith.addf %38, %35 : vector<8x128xf32>
    %45 = arith.addf %44, %29 : vector<8x128xf32>
    %cst_33 = arith.constant 0.000000e+00 : f32
    %46 = vector.broadcast %cst_33 : f32 to vector<8x128xf32>
    %47 = arith.maximumf %43, %46 : vector<8x128xf32>
    %cst_34 = arith.constant 0.000000e+00 : f32
    %48 = vector.broadcast %cst_34 : f32 to vector<8x128xf32>
    %49 = arith.maximumf %45, %48 : vector<8x128xf32>
    %50 = tpu.concatenate %47, %49 in 0 : vector<8x128xf32>, vector<8x128xf32> -> vector<16x128xf32>
    %51 = arith.truncf %50 : vector<16x128xf32> to vector<16x128xbf16>
    %c0_35 = arith.constant 0 : index
    %c0_36 = arith.constant 0 : index
    %52 = vector.load %arg12[%c0_35, %c0_36] : memref<128x128xbf16, #tpu.memory_space<vmem>>, vector<128x128xbf16>
    %cst_37 = arith.constant dense<0.000000e+00> : vector<16x128xf32>
    %53 = tpu.matmul %51, %52, %cst_37 {dimension_numbers = #tpu.dot_dimension_numbers<[1], [0], [0], [1], [0, 0, 1, 1], [], []>} : vector<16x128xbf16>, vector<128x128xbf16>, vector<16x128xf32> -> vector<16x128xf32>
    %c0_38 = arith.constant 0 : index
    %c0_39 = arith.constant 0 : index
    %54 = vector.load %arg13[%c0_38, %c0_39] : memref<1x128xf32, #tpu.memory_space<vmem>>, vector<1x128xf32>
    %55 = vector.broadcast %54 : vector<1x128xf32> to vector<16x128xf32>
    %56 = arith.addf %53, %55 : vector<16x128xf32>
    %cst_40 = arith.constant 0.000000e+00 : f32
    %57 = vector.broadcast %cst_40 : f32 to vector<16x128xf32>
    %58 = arith.maximumf %56, %57 : vector<16x128xf32>
    %59 = arith.truncf %58 : vector<16x128xf32> to vector<16x128xbf16>
    %c0_41 = arith.constant 0 : index
    %c0_42 = arith.constant 0 : index
    %60 = vector.load %arg14[%c0_41, %c0_42] : memref<128x128xbf16, #tpu.memory_space<vmem>>, vector<128x128xbf16>
    %cst_43 = arith.constant dense<0.000000e+00> : vector<16x128xf32>
    %61 = tpu.matmul %59, %60, %cst_43 {dimension_numbers = #tpu.dot_dimension_numbers<[1], [0], [0], [1], [0, 0, 1, 1], [], []>} : vector<16x128xbf16>, vector<128x128xbf16>, vector<16x128xf32> -> vector<16x128xf32>
    %c0_44 = arith.constant 0 : index
    %c0_45 = arith.constant 0 : index
    %62 = vector.load %arg15[%c0_44, %c0_45] : memref<1x128xf32, #tpu.memory_space<vmem>>, vector<1x128xf32>
    %63 = vector.broadcast %62 : vector<1x128xf32> to vector<16x128xf32>
    %64 = arith.addf %61, %63 : vector<16x128xf32>
    %65 = vector.extract_strided_slice %64 {offsets = [0, 0], sizes = [8, 128], strides = [1, 1]} : vector<16x128xf32> to vector<8x128xf32>
    %66 = vector.extract_strided_slice %64 {offsets = [8, 0], sizes = [8, 128], strides = [1, 1]} : vector<16x128xf32> to vector<8x128xf32>
    %67 = arith.addf %65, %66 : vector<8x128xf32>
    %cst_46 = arith.constant 5.000000e-01 : f32
    %68 = vector.broadcast %cst_46 : f32 to vector<8x128xf32>
    %69 = arith.mulf %68, %67 : vector<8x128xf32>
    %c0_47 = arith.constant 0 : index
    %c0_48 = arith.constant 0 : index
    %70 = vector.load %arg16[%c0_47, %c0_48] : memref<8x128xf32, #tpu.memory_space<vmem>>, vector<8x128xf32>
    tpu.vector_store %arg16[%c0_47, %c0_48], %69 {strides = array<i32>} : memref<8x128xf32, #tpu.memory_space<vmem>>, vector<8x128xf32>,
    return
  }
  func.func @transform_0(%arg0: i32) -> (i32, i32) {
    %c0_i32 = arith.constant 0 : i32
    %c0_i32_0 = arith.constant 0 : i32
    return %arg0, %c0_i32 : i32, i32
  }
  func.func @transform_1(%arg0: i32) -> (i32, i32) {
    %c0_i32 = arith.constant 0 : i32
    %c0_i32_0 = arith.constant 0 : i32
    return %arg0, %c0_i32 : i32, i32
  }
  func.func @transform_2(%arg0: i32) -> (i32, i32) {
    %c0_i32 = arith.constant 0 : i32
    %c0_i32_0 = arith.constant 0 : i32
    return %arg0, %c0_i32 : i32, i32
  }
  func.func @transform_3(%arg0: i32) -> (i32, i32) {
    %c0_i32 = arith.constant 0 : i32
    %c0_i32_0 = arith.constant 0 : i32
    %c0_i32_1 = arith.constant 0 : i32
    return %c0_i32, %c0_i32_0 : i32, i32
  }
  func.func @transform_4(%arg0: i32) -> (i32, i32) {
    %c0_i32 = arith.constant 0 : i32
    %c0_i32_0 = arith.constant 0 : i32
    %c0_i32_1 = arith.constant 0 : i32
    return %c0_i32, %c0_i32_0 : i32, i32
  }
  func.func @transform_5(%arg0: i32) -> (i32, i32) {
    %c0_i32 = arith.constant 0 : i32
    %c0_i32_0 = arith.constant 0 : i32
    %c0_i32_1 = arith.constant 0 : i32
    return %c0_i32, %c0_i32_0 : i32, i32
  }
  func.func @transform_6(%arg0: i32) -> (i32, i32) {
    %c0_i32 = arith.constant 0 : i32
    %c0_i32_0 = arith.constant 0 : i32
    %c0_i32_1 = arith.constant 0 : i32
    return %c0_i32, %c0_i32_0 : i32, i32
  }
  func.func @transform_7(%arg0: i32) -> (i32, i32) {
    %c0_i32 = arith.constant 0 : i32
    %c0_i32_0 = arith.constant 0 : i32
    %c0_i32_1 = arith.constant 0 : i32
    return %c0_i32, %c0_i32_0 : i32, i32
  }
  func.func @transform_8(%arg0: i32) -> (i32, i32) {
    %c0_i32 = arith.constant 0 : i32
    %c0_i32_0 = arith.constant 0 : i32
    %c0_i32_1 = arith.constant 0 : i32
    return %c0_i32, %c0_i32_0 : i32, i32
  }
  func.func @transform_9(%arg0: i32) -> (i32, i32) {
    %c0_i32 = arith.constant 0 : i32
    %c0_i32_0 = arith.constant 0 : i32
    %c0_i32_1 = arith.constant 0 : i32
    return %c0_i32, %c0_i32_0 : i32, i32
  }
  func.func @transform_10(%arg0: i32) -> (i32, i32) {
    %c0_i32 = arith.constant 0 : i32
    %c0_i32_0 = arith.constant 0 : i32
    %c0_i32_1 = arith.constant 0 : i32
    return %c0_i32, %c0_i32_0 : i32, i32
  }
  func.func @transform_11(%arg0: i32) -> (i32, i32) {
    %c0_i32 = arith.constant 0 : i32
    %c0_i32_0 = arith.constant 0 : i32
    %c0_i32_1 = arith.constant 0 : i32
    return %c0_i32, %c0_i32_0 : i32, i32
  }
  func.func @transform_12(%arg0: i32) -> (i32, i32) {
    %c0_i32 = arith.constant 0 : i32
    %c0_i32_0 = arith.constant 0 : i32
    %c0_i32_1 = arith.constant 0 : i32
    return %c0_i32, %c0_i32_0 : i32, i32
  }
  func.func @transform_13(%arg0: i32) -> (i32, i32) {
    %c0_i32 = arith.constant 0 : i32
    %c0_i32_0 = arith.constant 0 : i32
    %c0_i32_1 = arith.constant 0 : i32
    return %c0_i32, %c0_i32_0 : i32, i32
  }
  func.func @transform_14(%arg0: i32) -> (i32, i32) {
    %c0_i32 = arith.constant 0 : i32
    %c0_i32_0 = arith.constant 0 : i32
    %c0_i32_1 = arith.constant 0 : i32
    return %c0_i32, %c0_i32_0 : i32, i32
  }
  func.func @transform_15(%arg0: i32) -> (i32, i32) {
    %c0_i32 = arith.constant 0 : i32
    %c0_i32_0 = arith.constant 0 : i32
    return %arg0, %c0_i32 : i32, i32
  }
}

</mosaic_0001>

<bundles_post_ra>
// kernel: tpu_custom_call.1
= control target key start
LH: loop header
LB: loop body
LE: loop exit
PB: predicated region body
PF: predicated region fallthrough
CT: control target
= control target key end

     0   :  { %20 = vsyncpa [#allocation3], 0  ;;  %s1150_s0 = inlined_call_operand.hbm [shape: f32[8,32], index: 0, kind: input, shape index: {}]   ;;  %s1151_s1 = inlined_call_operand.hbm [shape: f32[8,32], index: 1, kind: input, shape index: {}]   ;;  %s1152_s2 = inlined_call_operand.hbm [shape: f32[8,16], index: 2, kind: input, shape index: {}]   ;;  %s1153_s3 = inlined_call_operand.hbm [shape: f32[1,32], index: 3, kind: input, shape index: {}]   ;;  %s1154_s4 = inlined_call_operand.hbm [shape: f32[1,32], index: 4, kind: input, shape index: {}]   ;;  %s1155_s5 = inlined_call_operand.hbm [shape: f32[1,16], index: 5, kind: input, shape index: {}]   ;;  %s1156_s6 = inlined_call_operand.hbm [shape: f32[1,16], index: 6, kind: input, shape index: {}]   ;;  %s1157_s7 = inlined_call_operand.hbm [shape: bf16[32,128], index: 7, kind: input, shape index: {}]   ;;  %s1158_s8 = inlined_call_operand.hbm [shape: bf16[32,128], index: 8, kind: input, shape index: {}]   ;;  %s1159_s9 = inlined_call_operand.vmem [shape: bf16[16,128], index: 9, kind: input, shape index: {}]   ;;  %s1160_s10 = inlined_call_operand.vmem [shape: f32[1,128], index: 10, kind: input, shape index: {}]   ;;  %s1161_s11 = inlined_call_operand.hbm [shape: bf16[128,128], index: 11, kind: input, shape index: {}]   ;;  %s1162_s12 = inlined_call_operand.vmem [shape: f32[1,128], index: 12, kind: input, shape index: {}]   ;;  %s1163_s13 = inlined_call_operand.hbm [shape: bf16[128,128], index: 13, kind: input, shape index: {}]   ;;  %s1164_s14 = inlined_call_operand.vmem [shape: f32[1,128], index: 14, kind: input, shape index: {}]   ;;  %s1165_s15 = inlined_call_operand.hbm [shape: f32[8,128], index: 15, kind: output, shape index: {}]  }
   0x1   :  { %21 = vsyncpa [#allocation6], 0 }
   0x2   :  { %22 = vsyncpa [#allocation9], 0 }
   0x3   :  { %23 = vsyncpa [#allocation12], 0 }
   0x4   :  { %24 = vsyncpa [#allocation15], 0 }
   0x5   :  { %25 = vsyncpa [#allocation18], 0  ;;  %s43_s20 = sshll.u32 %s1151_s1, 4  ;;  %s44_s20 = int_to_ptr.hbm [resolvable:$true] %s43_s20 }
   0x6   :  { %26 = vsyncpa [#allocation4], 0  ;;  %s996_s21 = smov [#allocation5]   ;;  %s65_s25 = sshll.u32 %s1153_s3, 4  ;;  %s66_s25 = int_to_ptr.hbm [resolvable:$true] %s65_s25 }
   0x7   :  { %s45_s22 = sshll.u32 %s996_s21, 4  ;;  %s997_s26 = smov [#allocation8]   ;;  %s46_s22 = int_to_ptr.vmem [resolvable:$true] %s45_s22 }
   0x8   :  { %48 = dma.hbm_to_vmem [thread:$0]  %s44_s20, 128, %s46_s22, [#allocation6]  }
   0x9   :  { %s67_s27 = sshll.u32 %s997_s26, 4  ;;  %s87_s30 = sshll.u32 %s1155_s5, 4  ;;  %s68_s27 = int_to_ptr.vmem [resolvable:$true] %s67_s27  ;;  %s88_s30 = int_to_ptr.hbm [resolvable:$true] %s87_s30 }
   0xa   :  { %70 = dma.hbm_to_vmem [thread:$0]  %s66_s25, 16, %s68_s27, [#allocation9]  }
   0xb   :  { %s108_s17 = sshll.u32 %s1157_s7, 4  ;;  %s998_s18 = smov [#allocation11]   ;;  %s109_s17 = int_to_ptr.hbm [resolvable:$true] %s108_s17 }
   0xc   :  { %s89_s19 = sshll.u32 %s998_s18, 4  ;;  %s999_s3 = smov [#allocation14]   ;;  %s90_s19 = int_to_ptr.vmem [resolvable:$true] %s89_s19 }
   0xd   :  { %92 = dma.hbm_to_vmem [thread:$0]  %s88_s30, 16, %s90_s19, [#allocation12]  }
   0xe   :  { %s110_s20 = sshll.u32 %s999_s3, 4  ;;  %s1000_s21 = smov 64   ;;  %s111_s20 = int_to_ptr.vmem [resolvable:$true] %s110_s20 }
   0xf   :  { %s1001_s22 = smov 4   ;;  %s138_s24 = sshll.u32 %s1161_s11, 4  ;;  %s139_s24 = int_to_ptr.hbm [resolvable:$true] %s138_s24 }
  0x10   :  { %116 = dma.hbm_to_vmem [thread:$0]  %s109_s17, 256, %s111_s20, [#allocation15], %s1000_s21, %s1000_s21, %s1001_s22  }
  0x11   :  { %s1002_s7 = smov [#allocation17]   ;;  %s32_s28 = sshll.u32 %s1150_s0, 4  ;;  %s33_s28 = int_to_ptr.hbm [resolvable:$true] %s32_s28 }
  0x12   :  { %s140_s25 = sshll.u32 %s1002_s7, 4  ;;  %s1003_s29 = smov [#allocation2]   ;;  %s141_s25 = int_to_ptr.vmem [resolvable:$true] %s140_s25 }
  0x13   :  { %146 = dma.hbm_to_vmem [thread:$0]  %s139_s24, 1024, %s141_s25, [#allocation18], %s1000_s21, %s1000_s21, %s1001_s22  }
  0x14   :  { %s34_s30 = sshll.u32 %s1003_s29, 4  ;;  %s54_s17 = sshll.u32 %s1152_s2, 4  ;;  %s35_s30 = int_to_ptr.vmem [resolvable:$true] %s34_s30  ;;  %s55_s17 = int_to_ptr.hbm [resolvable:$true] %s54_s17 }
  0x15   :  { %37 = dma.hbm_to_vmem [thread:$0]  %s33_s28, 128, %s35_s30, [#allocation3]  }
  0x16   :  { %s76_s19 = sshll.u32 %s1154_s4, 4  ;;  %s1004_s3 = smov [#allocation7]   ;;  %s77_s19 = int_to_ptr.hbm [resolvable:$true] %s76_s19 }
  0x17   :  { %s56_s0 = sshll.u32 %s1004_s3, 4  ;;  %s1005_s20 = smov [#allocation10]   ;;  %s57_s0 = int_to_ptr.vmem [resolvable:$true] %s56_s0 }
  0x18   :  { %59 = dma.hbm_to_vmem [thread:$0]  %s55_s17, 128, %s57_s0, [#allocation6]  }
  0x19   :  { %s78_s5 = sshll.u32 %s1005_s20, 4  ;;  %s98_s7 = sshll.u32 %s1156_s6, 4  ;;  %s79_s5 = int_to_ptr.vmem [resolvable:$true] %s78_s5  ;;  %s99_s7 = int_to_ptr.hbm [resolvable:$true] %s98_s7 }
  0x1a   :  { %81 = dma.hbm_to_vmem [thread:$0]  %s77_s19, 16, %s79_s5, [#allocation9]  }
  0x1b   :  { %s121_s26 = sshll.u32 %s1158_s8, 4  ;;  %s1006_s27 = smov [#allocation13]   ;;  %s122_s26 = int_to_ptr.hbm [resolvable:$true] %s121_s26 }
  0x1c   :  { %s100_s4 = sshll.u32 %s1006_s27, 4  ;;  %s1007_s28 = smov [#allocation16]   ;;  %s101_s4 = int_to_ptr.vmem [resolvable:$true] %s100_s4 }
  0x1d   :  { %103 = dma.hbm_to_vmem [thread:$0]  %s99_s7, 16, %s101_s4, [#allocation12]  }
  0x1e   :  { %s123_s29 = sshll.u32 %s1007_s28, 4  ;;  %s153_s16 = sshll.u32 %s1163_s13, 4  ;;  %s124_s29 = int_to_ptr.vmem [resolvable:$true] %s123_s29  ;;  %s154_s16 = int_to_ptr.hbm [resolvable:$true] %s153_s16 }
  0x1f   :  { %129 = dma.hbm_to_vmem [thread:$0]  %s122_s26, 256, %s124_s29, [#allocation15], %s1000_s21, %s1000_s21, %s1001_s22  }
  0x20   :  { %s1008_s6 = smov [#allocation19]  }
  0x21   :  { %s155_s17 = sshll.u32 %s1008_s6, 4  ;;  %s156_s17 = int_to_ptr.vmem [resolvable:$true] %s155_s17 }
  0x22   :  { %161 = dma.hbm_to_vmem [thread:$0]  %s154_s16, 1024, %s156_s17, [#allocation18], %s1000_s21, %s1000_s21, %s1001_s22  }
  0x23   :  { %982 = dma.done.wait [#allocation3], 128  }
  0x24   :  { %983 = vsyncadd [#allocation3], 4294967168 }
  0x25   :  { %984 = dma.done.wait [#allocation6], 256  }
  0x26   :  { %985 = vsyncadd [#allocation6], 4294967040 }
  0x27   :  { %986 = dma.done.wait [#allocation9], 32  }
  0x28   :  { %987 = vsyncadd [#allocation9], 4294967264 }
  0x29   :  { %988 = dma.done.wait [#allocation12], 32  }
  0x2a   :  { %989 = vsyncadd [#allocation12], 4294967264 }
  0x2b   :  { %990 = dma.done.wait [#allocation15], 512  }
  0x2c   :  { %991 = vsyncadd [#allocation15], 4294966784 }
  0x2d   :  { %992 = dma.done.wait [#allocation18], 2048  }
  0x2e   :  { %993 = vsyncadd [#allocation18], 4294965248  ;;  %v650_v0 = vld [vmem:[#allocation16 + $0x8] sm:$0xff]  ;;  %v646_v1 = vld [vmem:[%s1159_s9] sm:$0xff]  ;;  %vm250_vm0 = vcmask 130048   ;;  %vm288_vm1 = vcmask 261120  }
  0x2f   :  { %v649_v2 = vld [vmem:[#allocation16] sm:$0xff]  ;;  %v681_v4 = vld [vmem:[#allocation11] ss:$0 sm:$0xff]  ;;  %298 = vmatpush.bf16.msra.mxu3 %v650_v0  ;;  %261 = vmatpush.bf16.msra.mxu0 %v646_v1  ;;  %v682_v5 = vld [vmem:[#allocation13] ss:$0 sm:$0xff]  ;;  %s1009_s19 = smov [#allocation20]  }
  0x30   :  { %v225_v3 = vld [vmem:[#allocation7] sm:$0xff]  ;;  %v209_v6 = vld [vmem:[#allocation2] sm:$0xff]  ;;  %v683_v8 = vld [vmem:[#allocation8] ss:$0 sm:$0xff]  ;;  %s540_s3 = sshll.u32 %s1009_s19, 4  ;;  %s541_s3 = int_to_ptr.vmem [resolvable:$true] %s540_s3 }
  0x31   :  { %v230_v7 = vsub.f32 %v225_v3, %v681_v4  ;;  %v684_v9 = vld [vmem:[#allocation10] ss:$0 sm:$0xff]  ;;  %v648_v10 = vld [vmem:[#allocation14 + $0x8] sm:$0xff]  ;;  %v214_v12 = vsub.f32 %v209_v6, %v683_v8  ;;  %v647_v14 = vld [vmem:[#allocation14] sm:$0xff] }
  0x32   :  { %v221_v15 = vld [vmem:[#allocation5] sm:$0xff]  ;;  %v658_v24 = vld [vmem:[#allocation17 + $0x38] sm:$0xff]  ;;  %v657_v25 = vld [vmem:[#allocation17 + $0x30] sm:$0xff] }
  0x33   :  { %315 = vmatpush.bf16.msrb.mxu0 %v650_v0  ;;  %v235_v11 = vmul.f32 %v682_v5, %v230_v7  ;;  %299 = vmatpush.bf16.msra.mxu3 %v649_v2  ;;  %v219_v13 = vmul.f32 %v684_v9, %v214_v12  ;;  %v222_v16 = vsub.f32 %v221_v15, %v683_v8  ;;  %v656_v26 = vld [vmem:[#allocation17 + $0x28] sm:$0xff]  ;;  %v655_v27 = vld [vmem:[#allocation17 + $0x20] sm:$0xff]  ;;  %v654_v28 = vld [vmem:[#allocation17 + $0x18] sm:$0xff] }
  0x34   :  { %433 = vmatpush.bf16.msra.mxu1 %v658_v24  ;;  %v653_v29 = vld [vmem:[#allocation17 + $0x10] sm:$0xff]  ;;  %v652_v31 = vld [vmem:[#allocation17 + $0x8] sm:$0xff]  ;;  %v651_v32 = vld [vmem:[#allocation17] sm:$0xff] }
  0x35   :  { %688 = vtanh.f32 %v235_v11  ;;  %v223_v20 = vmul.f32 %v684_v9, %v222_v16  ;;  %v666_v35 = vld [vmem:[#allocation19 + $0x38] sm:$0xff]  ;;  %v665_v36 = vld [vmem:[#allocation19 + $0x30] sm:$0xff]  ;;  %v664_v37 = vld [vmem:[#allocation19 + $0x28] sm:$0xff] }
  0x36   :  { %690 = vtanh.f32 %v219_v13  ;;  %518 = vmatpush.bf16.msra.mxu2 %v666_v35  ;;  %v663_v40 = vld [vmem:[#allocation19 + $0x20] sm:$0xff]  ;;  %v662_v55 = vld [vmem:[#allocation19 + $0x18] sm:$0xff]  ;;  %v661_v56 = vld [vmem:[#allocation19 + $0x10] sm:$0xff] }
  0x37   :  { %316 = vmatpush.bf16.msrb.mxu0 %v649_v2  ;;  %340 = vmatpush.bf16.msrb.mxu3 %v648_v10  ;;  %692 = vtanh.f32 %v223_v20  ;;  %v685_v43 = vld [vmem:[%s1160_s10] ss:$0 sm:$0xff]  ;;  %v660_v57 = vld [vmem:[#allocation19 + $0x8] sm:$0xff] }
  0x38   :  { %434 = vmatpush.bf16.msra.mxu1 %v657_v25  ;;  %v659_v58 = vld [vmem:[#allocation19] sm:$0xff] }
  0x39   :  { %v686_v60 = vld [vmem:[%s1162_s12] ss:$0 sm:$0xff]  ;;  %s542_s12 = sshll.u32 %s1165_s15, 4  ;;  %s543_s12 = int_to_ptr.hbm [resolvable:$true] %s542_s12 }
  0x3a   :  { %519 = vmatpush.bf16.msra.mxu2 %v665_v36  ;;  %v687_v4 = vld [vmem:[%s1164_s14] ss:$0 sm:$0xff] }
  0x3b   :  { %341 = vmatpush.bf16.msrb.mxu3 %v647_v14  ;;  %v689_v17 = vpop.eup %688 }
  0x3c   :  { %v237_v18 = vpack.c.bf16 %v689_v17, %v689_v17  ;;  %v691_v19 = vpop.eup %690  ;;  %435 = vmatpush.bf16.msra.mxu1 %v656_v26 }
  0x3d   :  { %v267_v21 = vpack.c.bf16 %v691_v19, %v691_v19  ;;  %v693_v22 = vpop.eup %692 }
  0x3e   :  { %561 = vmatmul.msk.bf16.vlgmr.msra.gmra.mxu0 %vm250_vm0, %v237_v18  ;;  %v305_v23 = vpack.c.bf16 %v693_v22, %v693_v22  ;;  %520 = vmatpush.bf16.msra.mxu2 %v664_v37 }
  0x3f   :  { %354 = vmatpush.bf16.msra.mxu0 %v648_v10  ;;  %570 = vmatmul.msk.bf16.vlgmr.msra.gmra.mxu3 %vm288_vm1, %v267_v21 }
  0x40   :  { %436 = vmatpush.bf16.msra.mxu1 %v655_v27 }
  0x42   :  { %521 = vmatpush.bf16.msra.mxu2 %v663_v40 }
  0x43   :  { %355 = vmatpush.bf16.msra.mxu0 %v647_v14 }
  0x44   :  { %437 = vmatpush.bf16.msra.mxu1 %v654_v28 }
  0x46   :  { %522 = vmatpush.bf16.msra.mxu2 %v662_v55 }
  0x48   :  { %438 = vmatpush.bf16.msra.mxu1 %v653_v29 }
  0x4a   :  { %523 = vmatpush.bf16.msra.mxu2 %v661_v56 }
  0x4c   :  { %439 = vmatpush.bf16.msra.mxu1 %v652_v31 }
  0x4e   :  { %571 = vmatmul.msk.bf16.vlgmr.msrb.gmra.mxu0 %vm288_vm1, %v305_v23  ;;  %524 = vmatpush.bf16.msra.mxu2 %v660_v57 }
  0x4f   :  { %580 = vmatmul.msk.bf16.vlgmr.msrb.gmra.mxu3 %vm288_vm1, %v267_v21 }
  0x50   :  { %440 = vmatpush.bf16.msra.mxu1 %v651_v32 }
  0x52   :  { %525 = vmatpush.bf16.msra.mxu2 %v659_v58 }
  0x5e   :  { %581 = vmatmul.msk.bf16.vlgmr.msra.gmra.mxu0 %vm288_vm1, %v305_v23 }
  0xbb   :  { %v263_v30 = vpop.f32.mrf.mxu0 }
  0xbc   :  { %v264_v45 = vadd.f32 %v685_v43, %v263_v30 }
  0xc2   :  { %v301_v33 = vpop.f32.mrf.mxu3 }
  0xc3   :  { %v265_v34 = vpop.f32.mrf.mxu0 }
  0xca   :  { %v303_v38 = vpop.f32.mrf.mxu3 }
  0xcb   :  { %v318_v39 = vpop.f32.mrf.mxu0 }
  0xd2   :  { %v343_v41 = vpop.f32.mrf.mxu3 }
  0xd3   :  { %v320_v42 = vpop.f32.mrf.mxu0  ;;  %v344_v44 = vadd.f32 %v343_v41, %v318_v39 }
  0xd5   :  { %v347_v48 = vadd.f32 %v344_v44, %v264_v45 }
  0xd7   :  { %v362_v51 = vmax.f32 %v347_v48, 0.0 }
  0xda   :  { %v345_v46 = vpop.f32.mrf.mxu3 }
  0xdb   :  { %v357_v47 = vpop.f32.mrf.mxu0 }
  0xdc   :  { %v358_v49 = vadd.f32 %v357_v47, %v301_v33 }
  0xde   :  { %v361_v50 = vadd.f32 %v358_v49, %v264_v45 }
  0xe0   :  { %v363_v52 = vmax.f32 %v361_v50, 0.0 }
  0xe2   :  { %v364_v53 = vpack.c.bf16 %v363_v52, %v362_v51 }
  0xe3   :  { %v359_v54 = vpop.f32.mrf.mxu0 }
  0xe4   :  { %441 = vmatmul.bf16.vlgmr.msra.gmra.mxu1 %v364_v53 }
 0x161   :  { %v442_v59 = vpop.f32.mrf.mxu1 }
 0x162   :  { %v443_v61 = vadd.f32 %v686_v60, %v442_v59 }
 0x164   :  { %v447_v0 = vmax.f32 %v443_v61, 0.0 }
 0x169   :  { %v444_v62 = vpop.f32.mrf.mxu1 }
 0x16a   :  { %v445_v63 = vadd.f32 %v686_v60, %v444_v62 }
 0x16c   :  { %v448_v1 = vmax.f32 %v445_v63, 0.0 }
 0x16e   :  { %v449_v2 = vpack.c.bf16 %v448_v1, %v447_v0 }
 0x170   :  { %526 = vmatmul.bf16.vlgmr.msra.gmra.mxu2 %v449_v2 }
 0x1f3   :  { %v527_v3 = vpop.f32.mrf.mxu2 }
 0x1f4   :  { %v528_v6 = vadd.f32 %v687_v4, %v527_v3 }
 0x1fb   :  { %v529_v5 = vpop.f32.mrf.mxu2 }
 0x1fc   :  { %v530_v7 = vadd.f32 %v687_v4, %v529_v5 }
 0x1fe   :  { %v532_v8 = vadd.f32 %v530_v7, %v528_v6 }
 0x200   :  { %v533_v9 = vmul.f32 0.5, %v532_v8 }
 0x202   :  { %534 = vst [vmem:[#allocation20] sm:$0xff] %v533_v9 }
 0x203   :  { %545 = dma.vmem_to_hbm [thread:$0]  %s541_s3, 128, %s543_s12, [#allocation4]  }
 0x204   :  { %994 = dma.done.wait [#allocation4], 128  }
 0x205   :  { %995 = vsyncadd [#allocation4], 4294967168 }
 0x206   :  { %550 = vsyncpa [#allocation3], 1 }
 0x207   :  { %551 = vsyncpa [#allocation6], 1 }
 0x208   :  { %552 = vsyncpa [#allocation9], 1 }
 0x209   :  { %553 = vsyncpa [#allocation12], 1 }
 0x20a   :  { %554 = vsyncpa [#allocation15], 1 }
 0x20b   :  { %555 = vsyncpa [#allocation18], 1 }
 0x20c   :  { %556 = vsyncpa [#allocation4], 1 }

</bundles_post_ra>
